<compile_context>
chip_gen: v6e
topology: v6e:2x2x1
jax: 0.10.0
libtpu: 0.0.40
codegen_flags: <defaults>
</compile_context>

<pallas_src>
import functools

import jax
import jax.numpy as jnp
from jax.experimental import pallas as pl
from jax.experimental.pallas import tpu as pltpu


def _text_tokenizer_kernel(x_ref, w_ref, o_ref, xpad_ref, pool_ref, *,
                           kernel_size, stride, padding, L_conv,
                           max_pool, pool_k, pool_s, pool_p):
    """Conv2d(1->C, (K,E), bias=False) + MaxPool2d((pk,1),(ps,1),(pp,0)) per batch block."""
    BB, S, E = x_ref.shape
    C = o_ref.shape[-1]
    L_out = o_ref.shape[1]

    # --- stage x into the zero-padded bf16 VMEM buffer (single in-kernel cast) ---
    if padding > 0:
        zpad = jnp.zeros((BB, padding, E), xpad_ref.dtype)
        xpad_ref[:, :padding, :] = zpad
        xpad_ref[:, padding + S:, :] = zpad
    xpad_ref[:, padding:padding + S, :] = x_ref[...].astype(xpad_ref.dtype)

    # --- conv: per-k accumulation, batch block folded into the MXU M dimension ---
    M = BB * L_conv
    acc = jnp.zeros((M, C), jnp.float32)
    for k in range(kernel_size):                      # K is small & static -> unrolled
        if stride == 1:
            win = xpad_ref[:, k:k + L_conv, :]
        else:
            win = xpad_ref[:, pl.ds(k, L_conv, stride=stride), :]
        acc = acc + jnp.dot(win.reshape(M, E), w_ref[k],
                            preferred_element_type=jnp.float32)
    conv = acc.reshape(BB, L_conv, C)                 # (BB, L_conv, C) f32

    # --- max pool along the sequence axis (PyTorch pads with -inf) ---
    if max_pool:
        if pool_p > 0:
            neg = jnp.full((BB, pool_p, C), -jnp.inf, jnp.float32)
            pool_ref[:, :pool_p, :] = neg
            pool_ref[:, pool_p + L_conv:, :] = neg
        pool_ref[:, pool_p:pool_p + L_conv, :] = conv

        def tap(t):
            if pool_s == 1:
                return pool_ref[:, t:t + L_out, :]
            return pool_ref[:, pl.ds(t, L_out, stride=pool_s), :]

        out = tap(0)
        for t in range(1, pool_k):                    # pool_k-1 VPU maximums
            out = jnp.maximum(out, tap(t))
    else:
        out = conv

    o_ref[...] = out.astype(o_ref.dtype)


def _pick_batch_block(B, batch_block, *, S, S_pad, E, C, K, L_out, L_buf,
                      vmem_budget):
    """Largest BB that divides B, keeps >=2 grid steps (when B>1) and fits VMEM."""
    cap = min(batch_block, B)
    if B > 1:
        cap = min(cap, max(1, B // 2))   # >= 2 grid steps: pipelining + megacore
    for bb in range(cap, 0, -1):
        if B % bb:
            continue
        est = (2 * bb * S * E * 4        # double-buffered f32 input tile
               + 2 * K * E * C * 2       # double-buffered bf16 weight
               + 2 * bb * L_out * C * 4  # double-buffered f32 output tile
               + bb * S_pad * E * 2      # bf16 conv-padding scratch
               + bb * L_buf * C * 4)     # f32 pool scratch
        if est <= vmem_budget:
            return bb
    return 1


def text_tokenizer_forward(x, w_kec, *, kernel_size, stride, padding,
                           pool_k=3, pool_s=2, pool_p=1, max_pool=True,
                           batch_block=8):
    """x: (B, S, E) f32, w_kec: (K, E, C) f32  ->  ((B, L_out, C) f32, None)."""
    B, S, E = x.shape
    K, E2, C = w_kec.shape
    assert K == kernel_size and E2 == E
    L_conv = (S + 2 * padding - kernel_size) // stride + 1
    L_out = (L_conv + 2 * pool_p - pool_k) // pool_s + 1 if max_pool else L_conv
    assert L_conv >= 1 and L_out >= 1

    S_pad = S + 2 * padding
    L_buf = L_conv + (2 * pool_p if max_pool else 0)

    # bf16 MXU weight (tiny array; f32 accumulation happens inside the kernel).
    w_bf = w_kec.astype(jnp.bfloat16)

    # VMEM-sized batch block that divides B (no wrapper pad, lane-dense output).
    vmem_limit = 32 * 1024 * 1024        # within scoped/physical VMEM on v5e/v6e/v7x
    BB = _pick_batch_block(B, batch_block, S=S, S_pad=S_pad, E=E, C=C, K=K,
                           L_out=L_out, L_buf=L_buf,
                           vmem_budget=vmem_limit // 2)
    nb = B // BB

    kernel = functools.partial(
        _text_tokenizer_kernel, kernel_size=kernel_size, stride=stride,
        padding=padding, L_conv=L_conv, max_pool=max_pool,
        pool_k=pool_k, pool_s=pool_s, pool_p=pool_p)

    cost = pl.CostEstimate(
        flops=2 * B * L_conv * K * E * C,
        transcendentals=0,
        bytes_accessed=B * S * E * 4 + K * E * C * 2 + B * L_out * C * 4)

    out = pl.pallas_call(
        kernel,
        out_shape=jax.ShapeDtypeStruct((B, L_out, C), jnp.float32),
        grid=(nb,),
        in_specs=[pl.BlockSpec((BB, S, E), lambda i: (i, 0, 0)),
                  pl.BlockSpec((K, E, C), lambda i: (0, 0, 0))],
        out_specs=pl.BlockSpec((BB, L_out, C), lambda i: (i, 0, 0)),
        scratch_shapes=[pltpu.VMEM((BB, S_pad, E), jnp.bfloat16),
                        pltpu.VMEM((BB, L_buf, C), jnp.float32)],
        compiler_params=pltpu.CompilerParams(
            dimension_semantics=("parallel",),
            vmem_limit_bytes=vmem_limit),
        cost_estimate=cost,
    )(x, w_bf)

    return out, None  # matches PyTorch forward(x, mask=None) -> (x, mask)


def _reference_forward(x, w_kec, kernel_size, stride, padding,
                       pool_k, pool_s, pool_p, max_pool=True):
    """Pure-JAX reference of the same math (bf16-rounded MXU operands, f32 accum)."""
    xb = x.astype(jnp.bfloat16).astype(jnp.float32)
    wb = w_kec.astype(jnp.bfloat16).astype(jnp.float32)
    xp = jnp.pad(xb, ((0, 0), (padding, padding), (0, 0)))
    B, Sp, E = xp.shape
    C = wb.shape[-1]
    L_conv = (Sp - kernel_size) // stride + 1
    conv = jnp.zeros((B, L_conv, C), jnp.float32)
    for k in range(kernel_size):
        xk = xp[:, k:k + stride * (L_conv - 1) + 1:stride, :]
        conv = conv + jnp.einsum('ble,ec->blc', xk, wb[k],
                                 preferred_element_type=jnp.float32)
    if not max_pool:
        return conv
    src = jnp.pad(conv, ((0, 0), (pool_p, pool_p), (0, 0)),
                  constant_values=-jnp.inf)
    L_out = (L_conv + 2 * pool_p - pool_k) // pool_s + 1
    return jnp.stack(
        [jnp.max(src[:, j * pool_s:j * pool_s + pool_k, :], axis=1)
         for j in range(L_out)], axis=1)


if __name__ == "__main__":
    key = jax.random.PRNGKey(0)
    kx, kw = jax.random.split(key)

    # Small shapes consistent with the module's forward.
    B, S, E = 2, 8, 32           # batch, sequence length, embedding_dim
    C = 128                      # n_output_channels
    kernel_size, stride, padding = 3, 1, 1
    pool_k, pool_s, pool_p = 3, 2, 1

    x = jax.random.normal(kx, (B, S, E), dtype=jnp.float32)

    # Conv2d weight shape (C, 1, K, E), kaiming_normal_: std = sqrt(2 / fan_in),
    # fan_in = in_channels * K * E = 1 * K * E.
    fan_in = 1 * kernel_size * E
    std = (2.0 / fan_in) ** 0.5
    w_conv = jax.random.normal(kw, (C, 1, kernel_size, E), dtype=jnp.float32) * std
    w_kec = jnp.transpose(w_conv[:, 0], (1, 2, 0))   # (K, E, C)

    out, mask = text_tokenizer_forward(
        x, w_kec, kernel_size=kernel_size, stride=stride, padding=padding,
        pool_k=pool_k, pool_s=pool_s, pool_p=pool_p, max_pool=True)
    out = jax.block_until_ready(out)

    L_conv = (S + 2 * padding - kernel_size) // stride + 1
    L_out = (L_conv + 2 * pool_p - pool_k) // pool_s + 1
    assert out.shape == (B, L_out, C), out.shape
    assert mask is None

    ref = _reference_forward(x, w_kec, kernel_size, stride, padding,
                             pool_k, pool_s, pool_p)
    assert jnp.allclose(out, ref, rtol=1e-3, atol=1e-3), "mismatch vs reference"

    print("KERNEL_OK")
</pallas_src>

<mosaic_0001>
module attributes {stable_mosaic.version = 11 : i64} {
  func.func @_text_tokenizer_kernel(%arg0: i32, %arg1: memref<1x8x32xf32, #tpu.memory_space<vmem>>, %arg2: memref<3x32x128xbf16, #tpu.memory_space<vmem>>, %arg3: memref<1x4x128xf32, #tpu.memory_space<vmem>>, %arg4: memref<1x10x32xbf16, #tpu.memory_space<vmem>>, %arg5: memref<1x10x128xf32, #tpu.memory_space<vmem>>) attributes {dimension_semantics = [#tpu.dimension_semantics<parallel>], iteration_bounds = array<i64: 2>, scalar_prefetch = 0 : i64, scratch_operands = 2 : i64, tpu.core_type = #tpu.core_type<tc>, window_params = [{transform_indices = @transform_0, window_bounds = array<i64: 1, 8, 32>}, {pipeline_mode = #tpu.pipeline_mode<synchronous>, transform_indices = @transform_1, window_bounds = array<i64: 3, 32, 128>}, {transform_indices = @transform_2, window_bounds = array<i64: 1, 4, 128>}]} {
    %cst = arith.constant 0.000000e+00 : bf16
    %0 = vector.broadcast %cst : bf16 to vector<1x1x32xbf16>
    %c0 = arith.constant 0 : index
    %c0_0 = arith.constant 0 : index
    %c0_1 = arith.constant 0 : index
    %1 = vector.load %arg4[%c0, %c0_0, %c0_1] : memref<1x10x32xbf16, #tpu.memory_space<vmem>>, vector<1x1x32xbf16>
    tpu.vector_store %arg4[%c0, %c0_0, %c0_1], %0 {strides = array<i32>} : memref<1x10x32xbf16, #tpu.memory_space<vmem>>, vector<1x1x32xbf16>,
    %c0_2 = arith.constant 0 : index
    %c9 = arith.constant 9 : index
    %c0_3 = arith.constant 0 : index
    %2 = vector.load %arg4[%c0_2, %c9, %c0_3] : memref<1x10x32xbf16, #tpu.memory_space<vmem>>, vector<1x1x32xbf16>
    tpu.vector_store %arg4[%c0_2, %c9, %c0_3], %0 {strides = array<i32>} : memref<1x10x32xbf16, #tpu.memory_space<vmem>>, vector<1x1x32xbf16>,
    %c0_4 = arith.constant 0 : index
    %c0_5 = arith.constant 0 : index
    %c0_6 = arith.constant 0 : index
    %3 = vector.load %arg1[%c0_4, %c0_5, %c0_6] : memref<1x8x32xf32, #tpu.memory_space<vmem>>, vector<1x8x32xf32>
    %4 = arith.truncf %3 : vector<1x8x32xf32> to vector<1x8x32xbf16>
    %c0_7 = arith.constant 0 : index
    %c1 = arith.constant 1 : index
    %c0_8 = arith.constant 0 : index
    %5 = vector.load %arg4[%c0_7, %c1, %c0_8] : memref<1x10x32xbf16, #tpu.memory_space<vmem>>, vector<1x8x32xbf16>
    tpu.vector_store %arg4[%c0_7, %c1, %c0_8], %4 {strides = array<i32>} : memref<1x10x32xbf16, #tpu.memory_space<vmem>>, vector<1x8x32xbf16>,
    %cst_9 = arith.constant 0.000000e+00 : f32
    %6 = vector.broadcast %cst_9 : f32 to vector<8x128xf32>
    %c0_10 = arith.constant 0 : index
    %c0_11 = arith.constant 0 : index
    %c0_12 = arith.constant 0 : index
    %7 = vector.load %arg4[%c0_10, %c0_11, %c0_12] : memref<1x10x32xbf16, #tpu.memory_space<vmem>>, vector<1x8x32xbf16>
    %8 = vector.shape_cast %7 : vector<1x8x32xbf16> to vector<8x32xbf16>
    %c0_13 = arith.constant 0 : index
    %c0_14 = arith.constant 0 : index
    %c0_15 = arith.constant 0 : index
    %9 = vector.load %arg2[%c0_13, %c0_14, %c0_15] : memref<3x32x128xbf16, #tpu.memory_space<vmem>>, vector<1x32x128xbf16>
    %10 = vector.shape_cast %9 : vector<1x32x128xbf16> to vector<32x128xbf16>
    %cst_16 = arith.constant dense<0.000000e+00> : vector<8x128xf32>
    %11 = tpu.matmul %8, %10, %cst_16 {dimension_numbers = #tpu.dot_dimension_numbers<[1], [0], [0], [1], [0, 0, 1, 1], [], []>} : vector<8x32xbf16>, vector<32x128xbf16>, vector<8x128xf32> -> vector<8x128xf32>
    %12 = arith.addf %6, %11 : vector<8x128xf32>
    %c0_17 = arith.constant 0 : index
    %c1_18 = arith.constant 1 : index
    %c0_19 = arith.constant 0 : index
    %13 = vector.load %arg4[%c0_17, %c1_18, %c0_19] : memref<1x10x32xbf16, #tpu.memory_space<vmem>>, vector<1x8x32xbf16>
    %14 = vector.shape_cast %13 : vector<1x8x32xbf16> to vector<8x32xbf16>
    %c1_20 = arith.constant 1 : index
    %c0_21 = arith.constant 0 : index
    %c0_22 = arith.constant 0 : index
    %15 = vector.load %arg2[%c1_20, %c0_21, %c0_22] : memref<3x32x128xbf16, #tpu.memory_space<vmem>>, vector<1x32x128xbf16>
    %16 = vector.shape_cast %15 : vector<1x32x128xbf16> to vector<32x128xbf16>
    %cst_23 = arith.constant dense<0.000000e+00> : vector<8x128xf32>
    %17 = tpu.matmul %14, %16, %cst_23 {dimension_numbers = #tpu.dot_dimension_numbers<[1], [0], [0], [1], [0, 0, 1, 1], [], []>} : vector<8x32xbf16>, vector<32x128xbf16>, vector<8x128xf32> -> vector<8x128xf32>
    %18 = arith.addf %12, %17 : vector<8x128xf32>
    %c0_24 = arith.constant 0 : index
    %c2 = arith.constant 2 : index
    %c0_25 = arith.constant 0 : index
    %19 = vector.load %arg4[%c0_24, %c2, %c0_25] : memref<1x10x32xbf16, #tpu.memory_space<vmem>>, vector<1x8x32xbf16>
    %20 = vector.shape_cast %19 : vector<1x8x32xbf16> to vector<8x32xbf16>
    %c2_26 = arith.constant 2 : index
    %c0_27 = arith.constant 0 : index
    %c0_28 = arith.constant 0 : index
    %21 = vector.load %arg2[%c2_26, %c0_27, %c0_28] : memref<3x32x128xbf16, #tpu.memory_space<vmem>>, vector<1x32x128xbf16>
    %22 = vector.shape_cast %21 : vector<1x32x128xbf16> to vector<32x128xbf16>
    %cst_29 = arith.constant dense<0.000000e+00> : vector<8x128xf32>
    %23 = tpu.matmul %20, %22, %cst_29 {dimension_numbers = #tpu.dot_dimension_numbers<[1], [0], [0], [1], [0, 0, 1, 1], [], []>} : vector<8x32xbf16>, vector<32x128xbf16>, vector<8x128xf32> -> vector<8x128xf32>
    %24 = arith.addf %18, %23 : vector<8x128xf32>
    %25 = vector.shape_cast %24 : vector<8x128xf32> to vector<1x8x128xf32>
    %cst_30 = arith.constant 0xFF800000 : f32
    %26 = vector.broadcast %cst_30 : f32 to vector<1x1x128xf32>
    %c0_31 = arith.constant 0 : index
    %c0_32 = arith.constant 0 : index
    %c0_33 = arith.constant 0 : index
    %27 = vector.load %arg5[%c0_31, %c0_32, %c0_33] : memref<1x10x128xf32, #tpu.memory_space<vmem>>, vector<1x1x128xf32>
    tpu.vector_store %arg5[%c0_31, %c0_32, %c0_33], %26 {strides = array<i32>} : memref<1x10x128xf32, #tpu.memory_space<vmem>>, vector<1x1x128xf32>,
    %c0_34 = arith.constant 0 : index
    %c9_35 = arith.constant 9 : index
    %c0_36 = arith.constant 0 : index
    %28 = vector.load %arg5[%c0_34, %c9_35, %c0_36] : memref<1x10x128xf32, #tpu.memory_space<vmem>>, vector<1x1x128xf32>
    tpu.vector_store %arg5[%c0_34, %c9_35, %c0_36], %26 {strides = array<i32>} : memref<1x10x128xf32, #tpu.memory_space<vmem>>, vector<1x1x128xf32>,
    %c0_37 = arith.constant 0 : index
    %c1_38 = arith.constant 1 : index
    %c0_39 = arith.constant 0 : index
    %29 = vector.load %arg5[%c0_37, %c1_38, %c0_39] : memref<1x10x128xf32, #tpu.memory_space<vmem>>, vector<1x8x128xf32>
    tpu.vector_store %arg5[%c0_37, %c1_38, %c0_39], %25 {strides = array<i32>} : memref<1x10x128xf32, #tpu.memory_space<vmem>>, vector<1x8x128xf32>,
    %c0_40 = arith.constant 0 : index
    %c0_41 = arith.constant 0 : index
    %c0_42 = arith.constant 0 : index
    %30 = tpu.strided_load %arg5[%c0_40, %c0_41, %c0_42] {strides = array<i32: 1, 2, 1>} : memref<1x10x128xf32, #tpu.memory_space<vmem>>, vector<1x4x128xf32>
    %c0_43 = arith.constant 0 : index
    %c1_44 = arith.constant 1 : index
    %c0_45 = arith.constant 0 : index
    %31 = tpu.strided_load %arg5[%c0_43, %c1_44, %c0_45] {strides = array<i32: 1, 2, 1>} : memref<1x10x128xf32, #tpu.memory_space<vmem>>, vector<1x4x128xf32>
    %32 = arith.maximumf %30, %31 : vector<1x4x128xf32>
    %c0_46 = arith.constant 0 : index
    %c2_47 = arith.constant 2 : index
    %c0_48 = arith.constant 0 : index
    %33 = tpu.strided_load %arg5[%c0_46, %c2_47, %c0_48] {strides = array<i32: 1, 2, 1>} : memref<1x10x128xf32, #tpu.memory_space<vmem>>, vector<1x4x128xf32>
    %34 = arith.maximumf %32, %33 : vector<1x4x128xf32>
    %c0_49 = arith.constant 0 : index
    %c0_50 = arith.constant 0 : index
    %c0_51 = arith.constant 0 : index
    %35 = vector.load %arg3[%c0_49, %c0_50, %c0_51] : memref<1x4x128xf32, #tpu.memory_space<vmem>>, vector<1x4x128xf32>
    tpu.vector_store %arg3[%c0_49, %c0_50, %c0_51], %34 {strides = array<i32>} : memref<1x4x128xf32, #tpu.memory_space<vmem>>, vector<1x4x128xf32>,
    return
  }
  func.func @transform_0(%arg0: i32) -> (i32, i32, i32) {
    %c0_i32 = arith.constant 0 : i32
    %c0_i32_0 = arith.constant 0 : i32
    %c0_i32_1 = arith.constant 0 : i32
    return %arg0, %c0_i32, %c0_i32_0 : i32, i32, i32
  }
  func.func @transform_1(%arg0: i32) -> (i32, i32, i32) {
    %c0_i32 = arith.constant 0 : i32
    %c0_i32_0 = arith.constant 0 : i32
    %c0_i32_1 = arith.constant 0 : i32
    %c0_i32_2 = arith.constant 0 : i32
    return %c0_i32, %c0_i32_0, %c0_i32_1 : i32, i32, i32
  }
  func.func @transform_2(%arg0: i32) -> (i32, i32, i32) {
    %c0_i32 = arith.constant 0 : i32
    %c0_i32_0 = arith.constant 0 : i32
    %c0_i32_1 = arith.constant 0 : i32
    return %arg0, %c0_i32, %c0_i32_0 : i32, i32, i32
  }
}

</mosaic_0001>

<bundles_post_ra>
// kernel: tpu_custom_call.1
= control target key start
LH: loop header
LB: loop body
LE: loop exit
PB: predicated region body
PF: predicated region fallthrough
CT: control target
= control target key end

     0   :  { %7 = vsyncpa [#allocation5], 0  ;;  %s968_s0 = inlined_call_operand.hbm [shape: f32[2,8,32], index: 0, kind: input, shape index: {}]   ;;  %s969_s1 = inlined_call_operand.hbm [shape: bf16[3,32,128], index: 1, kind: input, shape index: {}]   ;;  %s970_s2 = inlined_call_operand.hbm [shape: f32[2,4,128], index: 2, kind: output, shape index: {}]  }
   0x1   :  { %9 = vsyncpa [#allocation5 + $0x1], 0 }
   0x2   :  { %10 = vsyncpa [#allocation8], 0 }
   0x3   :  { %11 = vsyncpa [#allocation6], 0 }
   0x4   :  { %13 = vsyncpa [#allocation6 + $0x1], 0  ;;  %s791_s9 = smov 0   ;;  %s793_s10 = smov 0  }
   0x5   :  { %s795_s11 = smov 0   ;;  %s797_s12 = smov 0  }
   0x6 LB: > { %s812_s13 = sadd.s32 4294967295, %s766_s12   ;;  %s514_s14 = sadd.s32 4294967294, %s766_s12   ;;  %s766_s12 = sphi %s797_s12, %s996_s12   ;;  %s762_s11 = sphi %s795_s11, %s995_s11   ;;  %s758_s10 = sphi %s793_s10, %s994_s10   ;;  %s754_s9 = sphi %s791_s9, %s993_s9  }
   0x7   : > { %p39_p0 = scmp.ne.s32.totalorder %s758_s10, %s754_s9  ;;  %p971_p1 = scmp.eq.s32.totalorder %s812_s13, 0 }
   0x8   : > { %p90_p3 = scmp.eq.s32.totalorder %s514_s14, 1  ;;  %p515_p5 = scmp.ge.s32.totalorder %s766_s12, 1 }
   0x9   : > { %p821_p4 = por %p971_p1, %p39_p0  ;;  %p97_p7 = scmp.lt.s32.totalorder %s766_s12, 3 }
   0xa   : > { %p826_p6 = por %p90_p3, %p39_p0  ;;  %s768_s18 = smov [#allocation7]  }
   0xb   : > { %s975_s15 = scalar_select %p821_p4, 1, 0 }
   0xc   : > { %s976_s16 = scalar_select %p826_p6, 1, 0 }
   0xd   : > { %p831_p8 = pnand %p515_p5, %p97_p7  ;;  %s109_s19 = sshll.u32 %s768_s18, 4  ;;  %s110_s19 = int_to_ptr.vmem [resolvable:$true] %s109_s19 }
   0xe   : > { %s845_s21 = sadd.s32 1, %s766_s12   ;;  %s26_s22 = sadd.s32 1, %s762_s11 }
   0xf   : > { %s977_s17 = scalar_select %p831_p8, 1, 0 }
  0x10   : > { %p582_p9 = pneg %p831_p8  ;;  %s23_s23 = ssub.s32 %s766_s12, %s845_s21 }
  0x11   : > { %s655_s24 = scalar_lea.vmem %s110_s19, 768  ;;  %p663_p5 = scmp.lt.s32.totalorder %s110_s19, %s110_s19 }
  0x12   : > { %p840_p11 = pnand %p582_p9, %p971_p1  ;;  %p656_p13 = scmp.ne.s32.totalorder %s110_s19, %s655_s24 }
  0x13   : > { %p664_p7 = scmp.lt.s32.totalorder %s655_s24, %s655_s24 }
  0x14   : > { %p646_p12 = pneg %p840_p11 }
  0x15   : > { %p665_p10 = por %p664_p7, %p663_p5 }
  0x16   : > { %p658_p0 = pnand %p656_p13, %p646_p12 }
  0x18   : > { %p659_p3 = pneg %p658_p0 }
  0x1a   : > { %p666_p2 = pnand %p665_p10, %p659_p3 }
  0x1c   : > { %669 = shalt.err (!%p666_p2)
}
  0x1d   : > { %s769_s25 = smov 64   ;;  %s770_s26 = smov 4  }
  0x1e   : > { %585 = dma.hbm_to_vmem [thread:$0]  (!%p840_p11), %s969_s1, 768, %s110_s19, [#allocation8], %s769_s25, %s769_s25, %s770_s26  }
  0x1f   : > { %p24_p9 = scmp.eq.s32.totalorder %s23_s23, 0  ;;  %p33_p12 = scmp.ne.s32.totalorder %s762_s11, %s758_s10 }
  0x20   : > { %p34_p10 = scmp.eq.s32.totalorder %s766_s12, 0  ;;  %p595_p2 = scmp.lt.s32.totalorder %s766_s12, 2 }
  0x21   : > { %s862_s29 = scalar_select %p24_p9, %s762_s11, %s26_s22  }
  0x22   : > { %p35_p13 = por %p34_p10, %p33_p12  ;;  %p979_p0 = scmp.eq.s32.totalorder %s812_s13, 1 }
  0x23   : > { %s123_s3 = sand.u32 1, %s762_s11   ;;  %s519_s4 = sshll.u32 %s766_s12, 7 }
  0x24   : > { %p866_p3 = por %p979_p0, %p33_p12  ;;  %s518_s5 = sshll.u32 %s123_s3, 3 }
  0x25   : > { %s875_s8 = scalar_lea.hbm %s968_s0, %s519_s4  ;;  %s127_s14 = scalar_lea.vmem [#allocation4], %s518_s5 }
  0x26   : > { %s980_s30 = scalar_select %p866_p3, 1, 0 }
  0x27   : > { %s134_s18 = sshll.u32 %s127_s14, 4  ;;  %p877_p11 = pnand %p595_p2, %p35_p13  ;;  %s135_s18 = int_to_ptr.vmem [resolvable:$true] %s134_s18 }
  0x28   : > { %s124_s20 = scalar_lea.sflag [#allocation5], %s123_s3  ;;  %s670_s22 = scalar_lea.hbm %s875_s8, 128 }
  0x29   : > { %p671_p5 = scmp.ne.s32.totalorder %s875_s8, %s670_s22  ;;  %p672_p7 = pneg %p877_p11 }
  0x2a   : > { %s675_s25 = scalar_lea.hbm %s968_s0, 256  ;;  %p676_p10 = scmp.lt.s32.totalorder %s875_s8, %s968_s0 }
  0x2b   : > { %p673_p9 = pnand %p672_p7, %p671_p5  ;;  %p677_p2 = scmp.lt.s32.totalorder %s675_s25, %s670_s22 }
  0x2d   : > { %p674_p12 = pneg %p673_p9  ;;  %p678_p13 = por %p677_p2, %p676_p10 }
  0x2f   : > { %p679_p0 = pnand %p678_p13, %p674_p12 }
  0x31   : > { %682 = shalt.err (!%p679_p0)
}
  0x32   : > { %s683_s28 = scalar_lea.vmem %s135_s18, 128  ;;  %s771_s3 = smov [#allocation4]  }
  0x33   : > { %p684_p1 = scmp.ne.s32.totalorder %s135_s18, %s683_s28  ;;  %s688_s4 = sshll.u32 %s771_s3, 4  ;;  %s689_s4 = int_to_ptr.vmem [resolvable:$false] %s688_s4 }
  0x34   : > { %s690_s5 = scalar_lea.vmem %s689_s4, 256  ;;  %p691_p5 = scmp.lt.s32.totalorder %s135_s18, %s689_s4 }
  0x35   : > { %p686_p6 = pnand %p684_p1, %p672_p7  ;;  %p692_p9 = scmp.lt.s32.totalorder %s690_s5, %s683_s28 }
  0x37   : > { %p687_p3 = pneg %p686_p6  ;;  %p693_p4 = por %p692_p9, %p691_p5 }
  0x39   : > { %p694_p8 = pnand %p693_p4, %p687_p3 }
  0x3b   : > { %697 = shalt.err (!%p694_p8)
}
  0x3c   : > { %589 = dma.hbm_to_vmem [thread:$0]  (!%p877_p11), %s875_s8, 128, %s135_s18, %s124_s20  }
  0x3d   : > { %p982_p12 = scmp.ne.s32.totalorder %s977_s17, 0 }
  0x3e   : > { %s898_s6 = sand.u32 (!%p982_p12), 1, %s758_s10   ;;  %p983_p1 = scmp.ne.s32.totalorder (!%p982_p12), %s975_s15, 0 }
  0x3f   : > { %143 = sbr.rel (%p982_p12) target bundleno = 330 (0x14a), region = 28  ;;  %s521_s7 = sshll.u32 (!%p982_p12), %s898_s6, 3 }
  0x40   : > { %s146_s14 = scalar_lea.sflag (!%p982_p12), [#allocation5], %s898_s6  ;;  %s149_s22 = scalar_lea.vmem (!%p982_p12), [#allocation4], %s521_s7 }
  0x44   : > { %741 = dma.done.wait (%p983_p1), %s146_s14, 128  }
  0x45   : > { %743 = vsyncadd (%p983_p1), %s146_s14, 4294967168  ;;  %p984_p4 = scmp.eq.s32.totalorder %s812_s13, 0 }
  0x47   : > { %745 = dma.done.wait (%p984_p4), [#allocation8], 768   ;;  %p985_p6 = pmov %p984_p4 }
  0x48   : > { %v772_v0 = vmov 0.0   ;;  %vm773_vm0 = vmmov 0   ;;  %vm175_vm1 = vcmask 253952   ;;  %vm176_vm2 = vsmask.f32 256  ;;  %v636_v3 = vld [vmem:[#allocation7 + $0x18] sm:$0xff]  }
  0x49   : > { %747 = vsyncadd (%p985_p6), [#allocation8], 4294966528  ;;  %550 = vmatprep.subr.bf16.mxu0 %v772_v0  ;;  %558 = vmatprep.subr.bf16.mxu1 %v772_v0  ;;  %vm181_vm3 = vsmask.f32 7938  ;;  %v637_v4 = vld [vmem:[#allocation7 + $0x8] sm:$0xff]   ;;  %v638_v5 = vld [vmem:[#allocation7 + $0x10] sm:$0xff]  }
  0x4a   : > { %554 = vmatprep.mubr.msk.bf16.mxu0 %vm773_vm0, %v772_v0  ;;  %562 = vmatprep.mubr.msk.bf16.mxu1 %vm773_vm0, %v772_v0  ;;  %vm912_vm4 = vmand %vm175_vm1, %vm176_vm2  ;;  %v639_v6 = vld [vmem:[#allocation7] sm:$0xff]   ;;  %v178_v7 = vld [vmem:[#allocation2] sm:$0x1]  ;;  %vm201_vm6 = vcmask 257024   ;;  %vm244_vm8 = vcmask 261120   ;;  %v774_v34 = vmov -inf  }
  0x4b   : > { %vm917_vm5 = vmand %vm175_vm1, %vm181_vm3  ;;  %551 = vmatpush3.bf16.msra.mxu0 %v636_v3  ;;  %559 = vmatpush3.bf16.msra.mxu1 %v637_v4  ;;  %v183_v8 = vld [vmem:[#allocation2 + $0x4] sm:$0x1]  ;;  %v179_v10 = vsel %vm912_vm4, 0, %v178_v7  ;;  %v641_v28 = vld [vmem:[#allocation7 + $0x28] sm:$0xff]   ;;  %409 = vst [vmem:[#allocation3] sm:$0x1] %v774_v34 }
  0x4c   : > { %552 = vmatprep.subr.bf16.mxu0 %v772_v0  ;;  %560 = vmatprep.subr.bf16.mxu1 %v772_v0  ;;  %v186_v9 = vld [vmem:[%s149_s22] sm:$0xff]  ;;  %v184_v11 = vsel %vm917_vm5, 0, %v183_v8  ;;  %180 = vst [vmem:[#allocation2] sm:$0x1] %v179_v10  ;;  %vm202_vm7 = vmand %vm201_vm6, %vm181_vm3  ;;  %v642_v32 = vld [vmem:[#allocation7 + $0x20] sm:$0xff]   ;;  %s523_s15 = sshll.u32 %s898_s6, 2 }
  0x4d   : > { %v540_v12 = vpack.c.bf16 %v186_v9, %v186_v9  ;;  %185 = vst [vmem:[#allocation2 + $0x4] sm:$0x1] %v184_v11  ;;  %s537_s17 = sshll.u32 %s812_s13, 6  ;;  %s173_s8 = scalar_lea.vmem [#allocation9], %s523_s15 }
  0x4e   : > { %s434_s18 = sshll.u32 %s173_s8, 4  ;;  %s432_s23 = scalar_lea.hbm %s970_s2, %s537_s17  ;;  %s435_s18 = int_to_ptr.vmem [resolvable:$true] %s434_s18 }
  0x4f   : > { %553 = vmatpush3.bf16.msra.mxu0 %v638_v5  ;;  %561 = vmatpush3.bf16.msra.mxu1 %v639_v6  ;;  %v192_v13 = vshrl.u32 %v540_v12, 16  ;;  %v195_v14 = vshll.u32 %v540_v12, 16  ;;  %s421_s24 = scalar_lea.sflag [#allocation6], %s898_s6  ;;  %s698_s25 = scalar_lea.vmem %s435_s18, 64 }
  0x50   : > { %566 = vmatprep.subr.bf16.mxu0 %v772_v0  ;;  %p699_p8 = scmp.ne.s32.totalorder %s435_s18, %s698_s25  ;;  %p990_p3 = scmp.ne.s32.totalorder %s980_s30, 0 }
  0x51   : > { %v194_v15 = vrot.slane %v192_v13, 7  ;;  %s775_s13 = smov [#allocation9]  }
  0x52   : > { %p700_p11 = pnand %p699_p8, %p990_p3  ;;  %s702_s26 = sshll.u32 %s775_s13, 4  ;;  %s703_s26 = int_to_ptr.vmem [resolvable:$false] %s702_s26 }
  0x53   : > { %v197_v16 = vor.u32 %v195_v14, %v194_v15  ;;  %v198_v17 = vrot.slane %v194_v15, 4  ;;  %v203_v18 = vld [vmem:[#allocation2] sm:$0xf]  ;;  %s704_s27 = scalar_lea.vmem %s703_s26, 128  ;;  %p705_p10 = scmp.lt.s32.totalorder %s435_s18, %s703_s26 }
  0x54   : > { %v206_v19 = vld [vmem:[#allocation2 + $0x4] sm:$0x1]  ;;  %p701_p7 = pneg %p700_p11  ;;  %p706_p2 = scmp.lt.s32.totalorder %s704_s27, %s698_s25 }
  0x55   : > { %v204_v20 = vsel %vm202_vm7, %v197_v16, %v203_v18  ;;  %v207_v21 = vsel %vm912_vm4, %v198_v17, %v206_v19 }
  0x56   : > { %205 = vst [vmem:[#allocation2] sm:$0xf] %v204_v20  ;;  %208 = vst [vmem:[#allocation2 + $0x4] sm:$0x1] %v207_v21  ;;  %p707_p13 = por %p706_p2, %p705_p10 }
  0x58   : > { %p708_p0 = pnand %p707_p13, %p701_p7 }
  0x5d   : > { %v209_v22 = vld [vmem:[#allocation2] sm:$0xf]  ;;  %v214_v23 = vld [vmem:[#allocation2 + $0x4] sm:$0x1] }
  0x5e   : > { %v525_v24 = vcombine.low %v209_v22, %v214_v23  ;;  %563 = vmatmul.mubr.msk.bf16.vlgmr.msra.gmra.mxu1 %vm244_vm8, %v209_v22  ;;  %v343_v29 = vld [vmem:[#allocation2] sm:$0xe] }
  0x5f   : > { %v532_v31 = vcombine.low %v343_v29, %v214_v23 }
  0x60   : > { %v226_v25 = vshrl.u32 %v525_v24, 16  ;;  %v228_v26 = vshll.u32 %v525_v24, 16 }
  0x61   : > { %v352_v33 = vrot.slane %v532_v31, 1 }
  0x62   : > { %v230_v27 = vrot.slane %v228_v26, 1 }
  0x64   : > { %v231_v30 = vor.u32 %v230_v27, %v226_v25 }
  0x66   : > { %555 = vmatmul.mubr.msk.bf16.vlgmr.msra.gmra.mxu0 %vm244_vm8, %v231_v30 }
  0x67   : > { %567 = vmatpush3.bf16.msra.mxu0 %v641_v28  ;;  %570 = vmatprep.mubr.msk.bf16.mxu0 %vm773_vm0, %v772_v0 }
  0x68   : > { %568 = vmatprep.subr.bf16.mxu0 %v772_v0 }
  0x6b   : > { %569 = vmatpush3.bf16.msra.mxu0 %v642_v32 }
  0x6e   : > { %571 = vmatmul.mubr.msk.bf16.vlgmr.msra.gmra.mxu0 %vm244_vm8, %v352_v33 }
 0x11e   : > { %v337_v35 = vpop.f32.mrf.mxu1 }
 0x120   : > { %v564_v36 = vpop.f32.mrf.mxu1 }
 0x122   : > { %v340_v37 = vpop.f32.mrf.mxu1 }
 0x124   : > { %v565_v38 = vpop.f32.mrf.mxu1 }
 0x126   : > { %v282_v39 = vpop.f32.mrf.mxu0 }
 0x127   : > { %v338_v43 = vadd.f32 %v337_v35, %v282_v39 }
 0x128   : > { %v556_v40 = vpop.f32.mrf.mxu0 }
 0x12a   : > { %v285_v41 = vpop.f32.mrf.mxu0 }
 0x12c   : > { %v557_v42 = vpop.f32.mrf.mxu0 }
 0x12e   : > { %v402_v44 = vpop.f32.mrf.mxu0 }
 0x12f   : > { %v408_v45 = vadd.f32 %v402_v44, %v338_v43 }
 0x130   : > { %v572_v46 = vpop.f32.mrf.mxu0 }
 0x131   : > { %411 = vst [vmem:[#allocation3 + $0x1] sm:$0xff] %v408_v45 }
 0x132   : > { %v405_v47 = vpop.f32.mrf.mxu0 }
 0x134   : > { %v573_v48 = vpop.f32.mrf.mxu0 }
 0x138   : > { %v412_v49 = vld [vmem:[#allocation3] ss:$2 sm:$0xf]  ;;  %v414_v50 = vld [vmem:[#allocation3 + $0x1] ss:$2 sm:$0xf] }
 0x139   : > { %v415_v51 = vmax.f32 %v412_v49, %v414_v50  ;;  %v417_v52 = vld [vmem:[#allocation3 + $0x2] ss:$2 sm:$0xf] }
 0x13b   : > { %v418_v53 = vmax.f32 %v415_v51, %v417_v52 }
 0x13d   : > { %419 = vst [vmem:[%s173_s8] sm:$0xf] %v418_v53 }
 0x13e   : > { %711 = shalt.err (!%p708_p0)
}
 0x13f   : > { %s712_s28 = scalar_lea.hbm %s432_s23, 64  ;;  %s716_s5 = scalar_lea.hbm %s970_s2, 128 }
 0x140   : > { %p713_p5 = scmp.ne.s32.totalorder %s432_s23, %s712_s28  ;;  %p717_p1 = scmp.lt.s32.totalorder %s432_s23, %s970_s2 }
 0x141   : > { %p718_p4 = scmp.lt.s32.totalorder %s716_s5, %s712_s28 }
 0x142   : > { %p714_p9 = pnand %p713_p5, %p990_p3 }
 0x143   : > { %p719_p6 = por %p718_p4, %p717_p1 }
 0x144   : > { %p715_p12 = pneg %p714_p9 }
 0x146   : > { %p720_p8 = pnand %p719_p6, %p715_p12 }
 0x148   : > { %723 = shalt.err (!%p720_p8)
}
 0x149   : > { %580 = dma.vmem_to_hbm [thread:$0]  (%p990_p3), %s435_s18, 64, %s432_s23, %s421_s24  }
 0x14a PF: > { %s446_s14 = sand.u32 1, %s754_s9   ;;  %p991_p11 = scmp.ne.s32.totalorder %s976_s16, 0 }
 0x14b   : > { %p992_p7 = scmp.ge.s32.totalorder %s766_s12, 2  ;;  %s447_s22 = scalar_lea.sflag [#allocation6], %s446_s14 }
 0x14d   : > { %p591_p10 = pnand %p992_p7, %p991_p11 }
 0x14f   : > { %p592_p2 = pneg %p591_p10 }
 0x151   : > { %749 = dma.done.wait (%p592_p2), %s447_s22, 64  }
 0x152   : > { %751 = vsyncadd (%p592_p2), %s447_s22, 4294967232  ;;  %p16_p13 = scmp.ge.s32.totalorder %s845_s21, 4   ;;  %s993_s9 = smov %s758_s10 }
 0x153   : > { %s994_s10 = smov %s762_s11  ;;  %s995_s11 = smov %s862_s29 }
 0x154   : > { %s996_s12 = smov %s845_s21  ;;  %18 = sbr.rel (!%p16_p13) target bundleno = 6 (0x6), region = 81 }
 0x159   :  { %452 = vsyncpa [#allocation5], 1 }
 0x15a   :  { %454 = vsyncpa [#allocation5 + $0x1], 1 }
 0x15b   :  { %455 = vsyncpa [#allocation8], 1 }
 0x15c   :  { %456 = vsyncpa [#allocation6], 1 }
 0x15d   :  { %458 = vsyncpa [#allocation6 + $0x1], 1 }

</bundles_post_ra>
